<compile_context>
chip_gen: v6e
topology: v6e:2x2x1
jax: 0.10.0
libtpu: 0.0.40
codegen_flags: <defaults>
</compile_context>

<pallas_src>
import functools

import jax
import jax.numpy as jnp
from jax.experimental import pallas as pl
from jax.experimental.pallas import tpu as pltpu


def _dilconv_kernel(x_ref, w1_ref, b1_ref, mask1_ref, w2_ref, b2_ref, mask2_ref,
                    o_ref, s1_ref, s2_ref, *, H, W, K, dilation, padding):
    """Fused conv3x3 + BN + ReLU + dilated convKxK + BN + ReLU, one batch element.

    x_ref     : VMEM (1, Cip, HW)       input image, channels-first, Ci padded to Cip
    w1_ref    : VMEM (Cop, 9*Cip)       conv1 weight (BN1 scale folded, padded)
    b1_ref    : VMEM (Cop, 1)           conv1 bias   (BN1 folded, padded)
    mask1_ref : VMEM (9, HW)            per-tap validity masks for the 3x3 conv
    w2_ref    : VMEM (Co, K*K*Cop)      conv2 weight (BN2 scale folded, padded)
    b2_ref    : VMEM (Co, 1)            BN2 shift (conv2 has no bias)
    mask2_ref : VMEM (K*K, HW)          per-tap validity masks for the dilated conv
    o_ref     : VMEM (1, Co, HW)        output, channels-first (== NCHW once reshaped)
    s1_ref    : VMEM (9*Cip, HW)        scratch: stage-1 im2col stack
    s2_ref    : VMEM (K*K*Cop, HW)      scratch: stage-2 im2col stack
    """
    HW = H * W

    def build_stack(src, stack_ref, m_ref, k, dil, pad):
        # src: (C, HW) channels-first feature map.  For every tap (ky, kx) place a
        # lane-rolled, boundary-masked copy of src into the im2col stack.
        c = src.shape[0]
        t = 0
        for ky in range(k):
            dy = ky * dil - pad
            for kx in range(k):
                dx = kx * dil - pad
                off = dy * W + dx                       # flat spatial offset of the tap
                if off == 0:
                    s = src
                else:
                    s = pltpu.roll(src, (-off) % HW, axis=1)   # s[:, i] = src[:, i+off]
                if dy != 0 or dx != 0:                  # boundary taps need masking
                    s = s * m_ref[t:t + 1, :]
                stack_ref[t * c:(t + 1) * c, :] = s
                t += 1

    # ---- stage 1: 3x3 conv (pad 1) + folded BN1 + ReLU, one stacked MXU matmul ----
    build_stack(x_ref[0], s1_ref, mask1_ref, 3, 1, 1)
    h = jnp.dot(w1_ref[...], s1_ref[...], preferred_element_type=jnp.float32)
    h = jnp.maximum(h + b1_ref[...], 0.0)               # (Cop, HW)

    # ---- stage 2: dilated KxK conv + folded BN2 + ReLU, one stacked MXU matmul ----
    build_stack(h, s2_ref, mask2_ref, K, dilation, padding)
    y = jnp.dot(w2_ref[...], s2_ref[...], preferred_element_type=jnp.float32)
    o_ref[0] = jnp.maximum(y + b2_ref[...], 0.0).astype(o_ref.dtype)


@functools.partial(
    jax.jit,
    static_argnames=("kernel_size", "stride", "padding", "dilation", "eps"))
def dilconv_forward(x, W1, b1, g1, be1, rm1, rv1, W2, g2, be2, rm2, rv2, *,
                    kernel_size, stride, padding, dilation, eps=1e-5):
    """Dilconv forward. x is NCHW; conv/BN parameters use PyTorch layouts."""
    N, Ci, H, W = x.shape
    Co = W1.shape[0]
    K = kernel_size
    HW = H * W
    assert stride >= 1
    # 'Same-size' dilated conv (canonical DARTS config); stride handled by subsampling.
    assert 2 * padding == dilation * (K - 1), \
        "requires 2*padding == dilation*(kernel_size-1)"

    Cip = max(8, ((Ci + 7) // 8) * 8)    # pad channel dims to sublane multiples so all
    Cop = max(8, ((Co + 7) // 8) * 8)    # in-kernel scratch stores are tile-aligned

    # ---- fold BatchNorms (running stats) into conv weights / biases (hoisted) ----
    s1 = g1 / jnp.sqrt(rv1 + eps)
    s2 = g2 / jnp.sqrt(rv2 + eps)

    w1 = jnp.zeros((Cop, 9, Cip), jnp.float32)
    w1 = w1.at[:Co, :, :Ci].set(
        jnp.transpose(W1 * s1[:, None, None, None], (0, 2, 3, 1)).reshape(Co, 9, Ci))
    w1 = w1.reshape(Cop, 9 * Cip)
    b1f = jnp.zeros((Cop, 1), jnp.float32).at[:Co, 0].set((b1 - rm1) * s1 + be1)

    w2 = jnp.zeros((Co, K * K, Cop), jnp.float32)
    w2 = w2.at[:, :, :Co].set(
        jnp.transpose(W2 * s2[:, None, None, None], (0, 2, 3, 1)).reshape(Co, K * K, Co))
    w2 = w2.reshape(Co, K * K * Cop)
    b2f = (be2 - rm2 * s2).reshape(Co, 1).astype(jnp.float32)

    # ---- channels-first, lane-dense spatial layout; zero-pad input channels ----
    x_flat = x.reshape(N, Ci, HW).astype(jnp.float32)
    if Cip != Ci:
        x_flat = jnp.pad(x_flat, ((0, 0), (0, Cip - Ci), (0, 0)))

    # ---- per-tap spatial validity masks (pure geometry, computed once) ----
    ys = jnp.arange(H, dtype=jnp.int32).reshape(H, 1)
    xs = jnp.arange(W, dtype=jnp.int32).reshape(1, W)

    def tap_masks(k, dil, pad):
        rows = []
        for ky in range(k):
            dy = ky * dil - pad
            for kx in range(k):
                dx = kx * dil - pad
                ok = ((ys + dy >= 0) & (ys + dy < H) &
                      (xs + dx >= 0) & (xs + dx < W))
                rows.append(ok.reshape(1, HW))
        return jnp.concatenate(rows, axis=0).astype(jnp.float32)      # (k*k, HW)

    mask1 = tap_masks(3, 1, 1)
    mask2 = tap_masks(K, dilation, padding)

    kernel = functools.partial(_dilconv_kernel, H=H, W=W, K=K,
                               dilation=dilation, padding=padding)

    out = pl.pallas_call(
        kernel,
        out_shape=jax.ShapeDtypeStruct((N, Co, HW), jnp.float32),
        grid=(N,),
        in_specs=[
            pl.BlockSpec((1, Cip, HW), lambda n: (n, 0, 0)),          # x (per batch)
            pl.BlockSpec((Cop, 9 * Cip), lambda n: (0, 0)),           # w1 (resident)
            pl.BlockSpec((Cop, 1), lambda n: (0, 0)),                 # b1
            pl.BlockSpec((9, HW), lambda n: (0, 0)),                  # masks stage 1
            pl.BlockSpec((Co, K * K * Cop), lambda n: (0, 0)),        # w2 (resident)
            pl.BlockSpec((Co, 1), lambda n: (0, 0)),                  # b2
            pl.BlockSpec((K * K, HW), lambda n: (0, 0)),              # masks stage 2
        ],
        out_specs=pl.BlockSpec((1, Co, HW), lambda n: (n, 0, 0)),
        scratch_shapes=[pltpu.VMEM((9 * Cip, HW), jnp.float32),
                        pltpu.VMEM((K * K * Cop, HW), jnp.float32)],
        compiler_params=pltpu.CompilerParams(dimension_semantics=("parallel",)),
    )(x_flat, w1, b1f, mask1, w2, b2f, mask2)

    y = out.reshape(N, Co, H, W)                                      # already NCHW
    if stride > 1:
        y = y[:, :, ::stride, ::stride]
    return y


def _reference(x, W1, b1, g1, be1, rm1, rv1, W2, g2, be2, rm2, rv2,
               kernel_size, stride, padding, dilation, eps=1e-5):
    """Pure-JAX reference matching the PyTorch module in eval mode."""
    dn = ('NCHW', 'OIHW', 'NCHW')
    y = jax.lax.conv_general_dilated(x, W1, (1, 1), [(1, 1), (1, 1)],
                                     dimension_numbers=dn)
    y = y + b1[None, :, None, None]
    y = ((y - rm1[None, :, None, None]) / jnp.sqrt(rv1[None, :, None, None] + eps)
         * g1[None, :, None, None] + be1[None, :, None, None])
    y = jnp.maximum(y, 0.0)
    y = jax.lax.conv_general_dilated(y, W2, (stride, stride),
                                     [(padding, padding), (padding, padding)],
                                     rhs_dilation=(dilation, dilation),
                                     dimension_numbers=dn)
    y = ((y - rm2[None, :, None, None]) / jnp.sqrt(rv2[None, :, None, None] + eps)
         * g2[None, :, None, None] + be2[None, :, None, None])
    return jnp.maximum(y, 0.0)


if __name__ == "__main__":
    key = jax.random.PRNGKey(0)
    N, Ci, H, W = 2, 4, 16, 16
    Co = 8
    K, stride, padding, dilation = 3, 1, 2, 2          # canonical DARTS dil-conv config

    ks = jax.random.split(key, 12)
    x = jax.random.normal(ks[0], (N, Ci, H, W), jnp.float32)
    W1 = jax.random.normal(ks[1], (Co, Ci, 3, 3), jnp.float32) * 0.2   # Conv2d(C_in,C_out,3)
    b1 = jax.random.normal(ks[2], (Co,), jnp.float32) * 0.1
    g1 = 1.0 + 0.1 * jax.random.normal(ks[3], (Co,), jnp.float32)      # BN1 gamma
    be1 = 0.1 * jax.random.normal(ks[4], (Co,), jnp.float32)           # BN1 beta
    rm1 = 0.1 * jax.random.normal(ks[5], (Co,), jnp.float32)           # BN1 running_mean
    rv1 = jax.random.uniform(ks[6], (Co,), jnp.float32, 0.5, 1.5)      # BN1 running_var
    W2 = jax.random.normal(ks[7], (Co, Co, K, K), jnp.float32) * 0.2   # dilated Conv2d, no bias
    g2 = 1.0 + 0.1 * jax.random.normal(ks[8], (Co,), jnp.float32)
    be2 = 0.1 * jax.random.normal(ks[9], (Co,), jnp.float32)
    rm2 = 0.1 * jax.random.normal(ks[10], (Co,), jnp.float32)
    rv2 = jax.random.uniform(ks[11], (Co,), jnp.float32, 0.5, 1.5)

    out = dilconv_forward(x, W1, b1, g1, be1, rm1, rv1, W2, g2, be2, rm2, rv2,
                          kernel_size=K, stride=stride, padding=padding,
                          dilation=dilation)
    out = jax.block_until_ready(out)

    H_out = (H + 2 * padding - dilation * (K - 1) - 1) // stride + 1
    W_out = (W + 2 * padding - dilation * (K - 1) - 1) // stride + 1
    assert out.shape == (N, Co, H_out, W_out), out.shape

    ref = _reference(x, W1, b1, g1, be1, rm1, rv1, W2, g2, be2, rm2, rv2,
                     K, stride, padding, dilation)
    err = float(jnp.max(jnp.abs(out - ref)))
    assert jnp.allclose(out, ref, atol=1e-4, rtol=1e-4), err
    print("KERNEL_OK")
</pallas_src>

<mosaic_0001>
module attributes {stable_mosaic.version = 11 : i64} {
  func.func @_dilconv_kernel(%arg0: i32, %arg1: memref<1x8x256xf32, #tpu.memory_space<vmem>>, %arg2: memref<8x72xf32, #tpu.memory_space<vmem>>, %arg3: memref<8x1xf32, #tpu.memory_space<vmem>>, %arg4: memref<9x256xf32, #tpu.memory_space<vmem>>, %arg5: memref<8x72xf32, #tpu.memory_space<vmem>>, %arg6: memref<8x1xf32, #tpu.memory_space<vmem>>, %arg7: memref<9x256xf32, #tpu.memory_space<vmem>>, %arg8: memref<1x8x256xf32, #tpu.memory_space<vmem>>, %arg9: memref<72x256xf32, #tpu.memory_space<vmem>>, %arg10: memref<72x256xf32, #tpu.memory_space<vmem>>) attributes {dimension_semantics = [#tpu.dimension_semantics<parallel>], iteration_bounds = array<i64: 2>, scalar_prefetch = 0 : i64, scratch_operands = 2 : i64, tpu.core_type = #tpu.core_type<tc>, window_params = [{transform_indices = @transform_0, window_bounds = array<i64: 1, 8, 256>}, {pipeline_mode = #tpu.pipeline_mode<synchronous>, transform_indices = @transform_1, window_bounds = array<i64: 8, 72>}, {pipeline_mode = #tpu.pipeline_mode<synchronous>, transform_indices = @transform_2, window_bounds = array<i64: 8, 1>}, {pipeline_mode = #tpu.pipeline_mode<synchronous>, transform_indices = @transform_3, window_bounds = array<i64: 9, 256>}, {pipeline_mode = #tpu.pipeline_mode<synchronous>, transform_indices = @transform_4, window_bounds = array<i64: 8, 72>}, {pipeline_mode = #tpu.pipeline_mode<synchronous>, transform_indices = @transform_5, window_bounds = array<i64: 8, 1>}, {pipeline_mode = #tpu.pipeline_mode<synchronous>, transform_indices = @transform_6, window_bounds = array<i64: 9, 256>}, {transform_indices = @transform_7, window_bounds = array<i64: 1, 8, 256>}]} {
    %c0 = arith.constant 0 : index
    %c0_0 = arith.constant 0 : index
    %c0_1 = arith.constant 0 : index
    %0 = vector.load %arg1[%c0, %c0_0, %c0_1] : memref<1x8x256xf32, #tpu.memory_space<vmem>>, vector<1x8x256xf32>
    %1 = vector.shape_cast %0 : vector<1x8x256xf32> to vector<8x256xf32>
    %c17_i32 = arith.constant 17 : i32
    %2 = tpu.dynamic_rotate %1 by %c17_i32 dim 1 : vector<8x256xf32>, i32 -> vector<8x256xf32>
    %c0_2 = arith.constant 0 : index
    %c0_3 = arith.constant 0 : index
    %3 = vector.load %arg4[%c0_2, %c0_3] : memref<9x256xf32, #tpu.memory_space<vmem>>, vector<1x256xf32>
    %4 = vector.broadcast %3 : vector<1x256xf32> to vector<8x256xf32>
    %5 = arith.mulf %2, %4 : vector<8x256xf32>
    %c0_4 = arith.constant 0 : index
    %c0_5 = arith.constant 0 : index
    %6 = vector.load %arg9[%c0_4, %c0_5] : memref<72x256xf32, #tpu.memory_space<vmem>>, vector<8x256xf32>
    tpu.vector_store %arg9[%c0_4, %c0_5], %5 {strides = array<i32>} : memref<72x256xf32, #tpu.memory_space<vmem>>, vector<8x256xf32>,
    %c16_i32 = arith.constant 16 : i32
    %7 = tpu.dynamic_rotate %1 by %c16_i32 dim 1 : vector<8x256xf32>, i32 -> vector<8x256xf32>
    %c1 = arith.constant 1 : index
    %c0_6 = arith.constant 0 : index
    %8 = vector.load %arg4[%c1, %c0_6] : memref<9x256xf32, #tpu.memory_space<vmem>>, vector<1x256xf32>
    %9 = vector.broadcast %8 : vector<1x256xf32> to vector<8x256xf32>
    %10 = arith.mulf %7, %9 : vector<8x256xf32>
    %c8 = arith.constant 8 : index
    %c0_7 = arith.constant 0 : index
    %11 = vector.load %arg9[%c8, %c0_7] : memref<72x256xf32, #tpu.memory_space<vmem>>, vector<8x256xf32>
    tpu.vector_store %arg9[%c8, %c0_7], %10 {strides = array<i32>} : memref<72x256xf32, #tpu.memory_space<vmem>>, vector<8x256xf32>,
    %c15_i32 = arith.constant 15 : i32
    %12 = tpu.dynamic_rotate %1 by %c15_i32 dim 1 : vector<8x256xf32>, i32 -> vector<8x256xf32>
    %c2 = arith.constant 2 : index
    %c0_8 = arith.constant 0 : index
    %13 = vector.load %arg4[%c2, %c0_8] : memref<9x256xf32, #tpu.memory_space<vmem>>, vector<1x256xf32>
    %14 = vector.broadcast %13 : vector<1x256xf32> to vector<8x256xf32>
    %15 = arith.mulf %12, %14 : vector<8x256xf32>
    %c16 = arith.constant 16 : index
    %c0_9 = arith.constant 0 : index
    %16 = vector.load %arg9[%c16, %c0_9] : memref<72x256xf32, #tpu.memory_space<vmem>>, vector<8x256xf32>
    tpu.vector_store %arg9[%c16, %c0_9], %15 {strides = array<i32>} : memref<72x256xf32, #tpu.memory_space<vmem>>, vector<8x256xf32>,
    %c1_i32 = arith.constant 1 : i32
    %17 = tpu.dynamic_rotate %1 by %c1_i32 dim 1 : vector<8x256xf32>, i32 -> vector<8x256xf32>
    %c3 = arith.constant 3 : index
    %c0_10 = arith.constant 0 : index
    %18 = vector.load %arg4[%c3, %c0_10] : memref<9x256xf32, #tpu.memory_space<vmem>>, vector<1x256xf32>
    %19 = vector.broadcast %18 : vector<1x256xf32> to vector<8x256xf32>
    %20 = arith.mulf %17, %19 : vector<8x256xf32>
    %c24 = arith.constant 24 : index
    %c0_11 = arith.constant 0 : index
    %21 = vector.load %arg9[%c24, %c0_11] : memref<72x256xf32, #tpu.memory_space<vmem>>, vector<8x256xf32>
    tpu.vector_store %arg9[%c24, %c0_11], %20 {strides = array<i32>} : memref<72x256xf32, #tpu.memory_space<vmem>>, vector<8x256xf32>,
    %c32 = arith.constant 32 : index
    %c0_12 = arith.constant 0 : index
    %22 = vector.load %arg9[%c32, %c0_12] : memref<72x256xf32, #tpu.memory_space<vmem>>, vector<8x256xf32>
    tpu.vector_store %arg9[%c32, %c0_12], %1 {strides = array<i32>} : memref<72x256xf32, #tpu.memory_space<vmem>>, vector<8x256xf32>,
    %c255_i32 = arith.constant 255 : i32
    %23 = tpu.dynamic_rotate %1 by %c255_i32 dim 1 : vector<8x256xf32>, i32 -> vector<8x256xf32>
    %c5 = arith.constant 5 : index
    %c0_13 = arith.constant 0 : index
    %24 = vector.load %arg4[%c5, %c0_13] : memref<9x256xf32, #tpu.memory_space<vmem>>, vector<1x256xf32>
    %25 = vector.broadcast %24 : vector<1x256xf32> to vector<8x256xf32>
    %26 = arith.mulf %23, %25 : vector<8x256xf32>
    %c40 = arith.constant 40 : index
    %c0_14 = arith.constant 0 : index
    %27 = vector.load %arg9[%c40, %c0_14] : memref<72x256xf32, #tpu.memory_space<vmem>>, vector<8x256xf32>
    tpu.vector_store %arg9[%c40, %c0_14], %26 {strides = array<i32>} : memref<72x256xf32, #tpu.memory_space<vmem>>, vector<8x256xf32>,
    %c241_i32 = arith.constant 241 : i32
    %28 = tpu.dynamic_rotate %1 by %c241_i32 dim 1 : vector<8x256xf32>, i32 -> vector<8x256xf32>
    %c6 = arith.constant 6 : index
    %c0_15 = arith.constant 0 : index
    %29 = vector.load %arg4[%c6, %c0_15] : memref<9x256xf32, #tpu.memory_space<vmem>>, vector<1x256xf32>
    %30 = vector.broadcast %29 : vector<1x256xf32> to vector<8x256xf32>
    %31 = arith.mulf %28, %30 : vector<8x256xf32>
    %c48 = arith.constant 48 : index
    %c0_16 = arith.constant 0 : index
    %32 = vector.load %arg9[%c48, %c0_16] : memref<72x256xf32, #tpu.memory_space<vmem>>, vector<8x256xf32>
    tpu.vector_store %arg9[%c48, %c0_16], %31 {strides = array<i32>} : memref<72x256xf32, #tpu.memory_space<vmem>>, vector<8x256xf32>,
    %c240_i32 = arith.constant 240 : i32
    %33 = tpu.dynamic_rotate %1 by %c240_i32 dim 1 : vector<8x256xf32>, i32 -> vector<8x256xf32>
    %c7 = arith.constant 7 : index
    %c0_17 = arith.constant 0 : index
    %34 = vector.load %arg4[%c7, %c0_17] : memref<9x256xf32, #tpu.memory_space<vmem>>, vector<1x256xf32>
    %35 = vector.broadcast %34 : vector<1x256xf32> to vector<8x256xf32>
    %36 = arith.mulf %33, %35 : vector<8x256xf32>
    %c56 = arith.constant 56 : index
    %c0_18 = arith.constant 0 : index
    %37 = vector.load %arg9[%c56, %c0_18] : memref<72x256xf32, #tpu.memory_space<vmem>>, vector<8x256xf32>
    tpu.vector_store %arg9[%c56, %c0_18], %36 {strides = array<i32>} : memref<72x256xf32, #tpu.memory_space<vmem>>, vector<8x256xf32>,
    %c239_i32 = arith.constant 239 : i32
    %38 = tpu.dynamic_rotate %1 by %c239_i32 dim 1 : vector<8x256xf32>, i32 -> vector<8x256xf32>
    %c8_19 = arith.constant 8 : index
    %c0_20 = arith.constant 0 : index
    %39 = vector.load %arg4[%c8_19, %c0_20] : memref<9x256xf32, #tpu.memory_space<vmem>>, vector<1x256xf32>
    %40 = vector.broadcast %39 : vector<1x256xf32> to vector<8x256xf32>
    %41 = arith.mulf %38, %40 : vector<8x256xf32>
    %c64 = arith.constant 64 : index
    %c0_21 = arith.constant 0 : index
    %42 = vector.load %arg9[%c64, %c0_21] : memref<72x256xf32, #tpu.memory_space<vmem>>, vector<8x256xf32>
    tpu.vector_store %arg9[%c64, %c0_21], %41 {strides = array<i32>} : memref<72x256xf32, #tpu.memory_space<vmem>>, vector<8x256xf32>,
    %c0_22 = arith.constant 0 : index
    %c0_23 = arith.constant 0 : index
    %43 = vector.load %arg2[%c0_22, %c0_23] : memref<8x72xf32, #tpu.memory_space<vmem>>, vector<8x72xf32>
    %c0_24 = arith.constant 0 : index
    %c0_25 = arith.constant 0 : index
    %44 = vector.load %arg9[%c0_24, %c0_25] : memref<72x256xf32, #tpu.memory_space<vmem>>, vector<72x256xf32>
    %cst = arith.constant dense<0.000000e+00> : vector<8x256xf32>
    %45 = tpu.matmul %43, %44, %cst {dimension_numbers = #tpu.dot_dimension_numbers<[1], [0], [0], [1], [0, 0, 1, 1], [], []>} : vector<8x72xf32>, vector<72x256xf32>, vector<8x256xf32> -> vector<8x256xf32>
    %c0_26 = arith.constant 0 : index
    %c0_27 = arith.constant 0 : index
    %46 = vector.load %arg3[%c0_26, %c0_27] : memref<8x1xf32, #tpu.memory_space<vmem>>, vector<8x1xf32>
    %47 = vector.broadcast %46 : vector<8x1xf32> to vector<8x256xf32>
    %48 = arith.addf %45, %47 : vector<8x256xf32>
    %cst_28 = arith.constant 0.000000e+00 : f32
    %49 = vector.broadcast %cst_28 : f32 to vector<8x256xf32>
    %50 = arith.maximumf %48, %49 : vector<8x256xf32>
    %c34_i32 = arith.constant 34 : i32
    %51 = tpu.dynamic_rotate %50 by %c34_i32 dim 1 : vector<8x256xf32>, i32 -> vector<8x256xf32>
    %c0_29 = arith.constant 0 : index
    %c0_30 = arith.constant 0 : index
    %52 = vector.load %arg7[%c0_29, %c0_30] : memref<9x256xf32, #tpu.memory_space<vmem>>, vector<1x256xf32>
    %53 = vector.broadcast %52 : vector<1x256xf32> to vector<8x256xf32>
    %54 = arith.mulf %51, %53 : vector<8x256xf32>
    %c0_31 = arith.constant 0 : index
    %c0_32 = arith.constant 0 : index
    %55 = vector.load %arg10[%c0_31, %c0_32] : memref<72x256xf32, #tpu.memory_space<vmem>>, vector<8x256xf32>
    tpu.vector_store %arg10[%c0_31, %c0_32], %54 {strides = array<i32>} : memref<72x256xf32, #tpu.memory_space<vmem>>, vector<8x256xf32>,
    %c32_i32 = arith.constant 32 : i32
    %56 = tpu.dynamic_rotate %50 by %c32_i32 dim 1 : vector<8x256xf32>, i32 -> vector<8x256xf32>
    %c1_33 = arith.constant 1 : index
    %c0_34 = arith.constant 0 : index
    %57 = vector.load %arg7[%c1_33, %c0_34] : memref<9x256xf32, #tpu.memory_space<vmem>>, vector<1x256xf32>
    %58 = vector.broadcast %57 : vector<1x256xf32> to vector<8x256xf32>
    %59 = arith.mulf %56, %58 : vector<8x256xf32>
    %c8_35 = arith.constant 8 : index
    %c0_36 = arith.constant 0 : index
    %60 = vector.load %arg10[%c8_35, %c0_36] : memref<72x256xf32, #tpu.memory_space<vmem>>, vector<8x256xf32>
    tpu.vector_store %arg10[%c8_35, %c0_36], %59 {strides = array<i32>} : memref<72x256xf32, #tpu.memory_space<vmem>>, vector<8x256xf32>,
    %c30_i32 = arith.constant 30 : i32
    %61 = tpu.dynamic_rotate %50 by %c30_i32 dim 1 : vector<8x256xf32>, i32 -> vector<8x256xf32>
    %c2_37 = arith.constant 2 : index
    %c0_38 = arith.constant 0 : index
    %62 = vector.load %arg7[%c2_37, %c0_38] : memref<9x256xf32, #tpu.memory_space<vmem>>, vector<1x256xf32>
    %63 = vector.broadcast %62 : vector<1x256xf32> to vector<8x256xf32>
    %64 = arith.mulf %61, %63 : vector<8x256xf32>
    %c16_39 = arith.constant 16 : index
    %c0_40 = arith.constant 0 : index
    %65 = vector.load %arg10[%c16_39, %c0_40] : memref<72x256xf32, #tpu.memory_space<vmem>>, vector<8x256xf32>
    tpu.vector_store %arg10[%c16_39, %c0_40], %64 {strides = array<i32>} : memref<72x256xf32, #tpu.memory_space<vmem>>, vector<8x256xf32>,
    %c2_i32 = arith.constant 2 : i32
    %66 = tpu.dynamic_rotate %50 by %c2_i32 dim 1 : vector<8x256xf32>, i32 -> vector<8x256xf32>
    %c3_41 = arith.constant 3 : index
    %c0_42 = arith.constant 0 : index
    %67 = vector.load %arg7[%c3_41, %c0_42] : memref<9x256xf32, #tpu.memory_space<vmem>>, vector<1x256xf32>
    %68 = vector.broadcast %67 : vector<1x256xf32> to vector<8x256xf32>
    %69 = arith.mulf %66, %68 : vector<8x256xf32>
    %c24_43 = arith.constant 24 : index
    %c0_44 = arith.constant 0 : index
    %70 = vector.load %arg10[%c24_43, %c0_44] : memref<72x256xf32, #tpu.memory_space<vmem>>, vector<8x256xf32>
    tpu.vector_store %arg10[%c24_43, %c0_44], %69 {strides = array<i32>} : memref<72x256xf32, #tpu.memory_space<vmem>>, vector<8x256xf32>,
    %c32_45 = arith.constant 32 : index
    %c0_46 = arith.constant 0 : index
    %71 = vector.load %arg10[%c32_45, %c0_46] : memref<72x256xf32, #tpu.memory_space<vmem>>, vector<8x256xf32>
    tpu.vector_store %arg10[%c32_45, %c0_46], %50 {strides = array<i32>} : memref<72x256xf32, #tpu.memory_space<vmem>>, vector<8x256xf32>,
    %c254_i32 = arith.constant 254 : i32
    %72 = tpu.dynamic_rotate %50 by %c254_i32 dim 1 : vector<8x256xf32>, i32 -> vector<8x256xf32>
    %c5_47 = arith.constant 5 : index
    %c0_48 = arith.constant 0 : index
    %73 = vector.load %arg7[%c5_47, %c0_48] : memref<9x256xf32, #tpu.memory_space<vmem>>, vector<1x256xf32>
    %74 = vector.broadcast %73 : vector<1x256xf32> to vector<8x256xf32>
    %75 = arith.mulf %72, %74 : vector<8x256xf32>
    %c40_49 = arith.constant 40 : index
    %c0_50 = arith.constant 0 : index
    %76 = vector.load %arg10[%c40_49, %c0_50] : memref<72x256xf32, #tpu.memory_space<vmem>>, vector<8x256xf32>
    tpu.vector_store %arg10[%c40_49, %c0_50], %75 {strides = array<i32>} : memref<72x256xf32, #tpu.memory_space<vmem>>, vector<8x256xf32>,
    %c226_i32 = arith.constant 226 : i32
    %77 = tpu.dynamic_rotate %50 by %c226_i32 dim 1 : vector<8x256xf32>, i32 -> vector<8x256xf32>
    %c6_51 = arith.constant 6 : index
    %c0_52 = arith.constant 0 : index
    %78 = vector.load %arg7[%c6_51, %c0_52] : memref<9x256xf32, #tpu.memory_space<vmem>>, vector<1x256xf32>
    %79 = vector.broadcast %78 : vector<1x256xf32> to vector<8x256xf32>
    %80 = arith.mulf %77, %79 : vector<8x256xf32>
    %c48_53 = arith.constant 48 : index
    %c0_54 = arith.constant 0 : index
    %81 = vector.load %arg10[%c48_53, %c0_54] : memref<72x256xf32, #tpu.memory_space<vmem>>, vector<8x256xf32>
    tpu.vector_store %arg10[%c48_53, %c0_54], %80 {strides = array<i32>} : memref<72x256xf32, #tpu.memory_space<vmem>>, vector<8x256xf32>,
    %c224_i32 = arith.constant 224 : i32
    %82 = tpu.dynamic_rotate %50 by %c224_i32 dim 1 : vector<8x256xf32>, i32 -> vector<8x256xf32>
    %c7_55 = arith.constant 7 : index
    %c0_56 = arith.constant 0 : index
    %83 = vector.load %arg7[%c7_55, %c0_56] : memref<9x256xf32, #tpu.memory_space<vmem>>, vector<1x256xf32>
    %84 = vector.broadcast %83 : vector<1x256xf32> to vector<8x256xf32>
    %85 = arith.mulf %82, %84 : vector<8x256xf32>
    %c56_57 = arith.constant 56 : index
    %c0_58 = arith.constant 0 : index
    %86 = vector.load %arg10[%c56_57, %c0_58] : memref<72x256xf32, #tpu.memory_space<vmem>>, vector<8x256xf32>
    tpu.vector_store %arg10[%c56_57, %c0_58], %85 {strides = array<i32>} : memref<72x256xf32, #tpu.memory_space<vmem>>, vector<8x256xf32>,
    %c222_i32 = arith.constant 222 : i32
    %87 = tpu.dynamic_rotate %50 by %c222_i32 dim 1 : vector<8x256xf32>, i32 -> vector<8x256xf32>
    %c8_59 = arith.constant 8 : index
    %c0_60 = arith.constant 0 : index
    %88 = vector.load %arg7[%c8_59, %c0_60] : memref<9x256xf32, #tpu.memory_space<vmem>>, vector<1x256xf32>
    %89 = vector.broadcast %88 : vector<1x256xf32> to vector<8x256xf32>
    %90 = arith.mulf %87, %89 : vector<8x256xf32>
    %c64_61 = arith.constant 64 : index
    %c0_62 = arith.constant 0 : index
    %91 = vector.load %arg10[%c64_61, %c0_62] : memref<72x256xf32, #tpu.memory_space<vmem>>, vector<8x256xf32>
    tpu.vector_store %arg10[%c64_61, %c0_62], %90 {strides = array<i32>} : memref<72x256xf32, #tpu.memory_space<vmem>>, vector<8x256xf32>,
    %c0_63 = arith.constant 0 : index
    %c0_64 = arith.constant 0 : index
    %92 = vector.load %arg5[%c0_63, %c0_64] : memref<8x72xf32, #tpu.memory_space<vmem>>, vector<8x72xf32>
    %c0_65 = arith.constant 0 : index
    %c0_66 = arith.constant 0 : index
    %93 = vector.load %arg10[%c0_65, %c0_66] : memref<72x256xf32, #tpu.memory_space<vmem>>, vector<72x256xf32>
    %cst_67 = arith.constant dense<0.000000e+00> : vector<8x256xf32>
    %94 = tpu.matmul %92, %93, %cst_67 {dimension_numbers = #tpu.dot_dimension_numbers<[1], [0], [0], [1], [0, 0, 1, 1], [], []>} : vector<8x72xf32>, vector<72x256xf32>, vector<8x256xf32> -> vector<8x256xf32>
    %c0_68 = arith.constant 0 : index
    %c0_69 = arith.constant 0 : index
    %95 = vector.load %arg6[%c0_68, %c0_69] : memref<8x1xf32, #tpu.memory_space<vmem>>, vector<8x1xf32>
    %96 = vector.broadcast %95 : vector<8x1xf32> to vector<8x256xf32>
    %97 = arith.addf %94, %96 : vector<8x256xf32>
    %cst_70 = arith.constant 0.000000e+00 : f32
    %98 = vector.broadcast %cst_70 : f32 to vector<8x256xf32>
    %99 = arith.maximumf %97, %98 : vector<8x256xf32>
    %c0_71 = arith.constant 0 : index
    %c0_72 = arith.constant 0 : index
    %c0_73 = arith.constant 0 : index
    %100 = vector.load %arg8[%c0_71, %c0_72, %c0_73] : memref<1x8x256xf32, #tpu.memory_space<vmem>>, vector<1x8x256xf32>
    %101 = vector.shape_cast %100 : vector<1x8x256xf32> to vector<8x256xf32>
    %102 = vector.shape_cast %99 : vector<8x256xf32> to vector<1x8x256xf32>
    tpu.vector_store %arg8[%c0_71, %c0_72, %c0_73], %102 {strides = array<i32>} : memref<1x8x256xf32, #tpu.memory_space<vmem>>, vector<1x8x256xf32>,
    return
  }
  func.func @transform_0(%arg0: i32) -> (i32, i32, i32) {
    %c0_i32 = arith.constant 0 : i32
    %c0_i32_0 = arith.constant 0 : i32
    %c0_i32_1 = arith.constant 0 : i32
    return %arg0, %c0_i32, %c0_i32_0 : i32, i32, i32
  }
  func.func @transform_1(%arg0: i32) -> (i32, i32) {
    %c0_i32 = arith.constant 0 : i32
    %c0_i32_0 = arith.constant 0 : i32
    %c0_i32_1 = arith.constant 0 : i32
    return %c0_i32, %c0_i32_0 : i32, i32
  }
  func.func @transform_2(%arg0: i32) -> (i32, i32) {
    %c0_i32 = arith.constant 0 : i32
    %c0_i32_0 = arith.constant 0 : i32
    %c0_i32_1 = arith.constant 0 : i32
    return %c0_i32, %c0_i32_0 : i32, i32
  }
  func.func @transform_3(%arg0: i32) -> (i32, i32) {
    %c0_i32 = arith.constant 0 : i32
    %c0_i32_0 = arith.constant 0 : i32
    %c0_i32_1 = arith.constant 0 : i32
    return %c0_i32, %c0_i32_0 : i32, i32
  }
  func.func @transform_4(%arg0: i32) -> (i32, i32) {
    %c0_i32 = arith.constant 0 : i32
    %c0_i32_0 = arith.constant 0 : i32
    %c0_i32_1 = arith.constant 0 : i32
    return %c0_i32, %c0_i32_0 : i32, i32
  }
  func.func @transform_5(%arg0: i32) -> (i32, i32) {
    %c0_i32 = arith.constant 0 : i32
    %c0_i32_0 = arith.constant 0 : i32
    %c0_i32_1 = arith.constant 0 : i32
    return %c0_i32, %c0_i32_0 : i32, i32
  }
  func.func @transform_6(%arg0: i32) -> (i32, i32) {
    %c0_i32 = arith.constant 0 : i32
    %c0_i32_0 = arith.constant 0 : i32
    %c0_i32_1 = arith.constant 0 : i32
    return %c0_i32, %c0_i32_0 : i32, i32
  }
  func.func @transform_7(%arg0: i32) -> (i32, i32, i32) {
    %c0_i32 = arith.constant 0 : i32
    %c0_i32_0 = arith.constant 0 : i32
    %c0_i32_1 = arith.constant 0 : i32
    return %arg0, %c0_i32, %c0_i32_0 : i32, i32, i32
  }
}

</mosaic_0001>

<bundles_post_ra>
// kernel: dilconv_forward.1
= control target key start
LH: loop header
LB: loop body
LE: loop exit
PB: predicated region body
PF: predicated region fallthrough
CT: control target
= control target key end

     0   :  { %s1051_s24 = smov 0   ;;  %s1239_s0 = inlined_call_operand.vmem [shape: f32[2,8,256], index: 0, kind: input, shape index: {}]   ;;  %s1240_s1 = inlined_call_operand.vmem [shape: f32[8,72], index: 1, kind: input, shape index: {}]   ;;  %s1241_s2 = inlined_call_operand.vmem [shape: f32[8,1], index: 2, kind: input, shape index: {}]   ;;  %s1242_s3 = inlined_call_operand.vmem [shape: f32[9,256], index: 3, kind: input, shape index: {}]   ;;  %s1243_s4 = inlined_call_operand.vmem [shape: f32[8,72], index: 4, kind: input, shape index: {}]   ;;  %s1244_s5 = inlined_call_operand.vmem [shape: f32[8,1], index: 5, kind: input, shape index: {}]   ;;  %s1245_s6 = inlined_call_operand.vmem [shape: f32[9,256], index: 6, kind: input, shape index: {}]   ;;  %s1246_s7 = inlined_call_operand.vmem [shape: f32[2,8,256], index: 7, kind: output, shape index: {}]  }
   0x1 LB: > { %s929_s25 = sadd.s32 4294967295, %s991_s24   ;;  %p933_p0 = scmp.ge.s32.totalorder %s991_s24, 1  ;;  %s991_s24 = sphi %s1051_s24, %s17_s24  }
   0x2   : > { %p237_p1 = scmp.lt.s32.totalorder %s991_s24, 3 }
   0x4   : > { %p238_p2 = pnand %p933_p0, %p237_p1 }
   0x5   : > { %p269_p3 = scmp.lt.s32.totalorder (!%p238_p2), %s929_s25, 1  ;;  %s993_s30 = smov (!%p238_p2), 112  }
   0x6   : > { %241 = sbr.rel (%p238_p2) target bundleno = 712 (0x2c8), region = 48  ;;  %s994_s8 = smov (!%p238_p2), 111  }
   0x7   : > { %s995_s9 = smov (!%p238_p2), 113   ;;  %s996_s10 = smov (!%p238_p2), 127  }
   0x8   : > { %s997_s11 = smov (!%p238_p2), 1   ;;  %s999_s12 = smov (!%p238_p2), 15  }
   0x9   : > { %s1001_s13 = smov (!%p238_p2), 16   ;;  %s1002_s14 = smov (!%p238_p2), 17  }
   0xa   : > { %s1003_s15 = smov (!%p238_p2), 96   ;;  %s1004_s16 = smov (!%p238_p2), 94  }
   0xb   : > { %s1248_s25 = smov (!%p269_p3, %s929_s25), 1  ;;  %v998_v2 = vmov 0.0   ;;  %v1000_v3 = vmov 0   ;;  %v495_v4 = vld [vmem:[%s1241_s2] sm:$0xff]  ;;  %v285_v5 = vlaneseq  ;;  %vm501_vm8 = vcmask 588800   ;;  %s1005_s17 = smov 98  }
   0xc   : > { %s956_s26 = sshll.u32 %s1248_s25, 4  ;;  %569 = vmatprep.mubr.f32.mxu0 %v998_v2  ;;  %863 = vmatprep.mubr.f32.mxu1 %v998_v2  ;;  %v944_v10 = vld [vmem:[%s1242_s3 + $0x10] ss:$8 sm:$0x3]  ;;  %s1006_s18 = smov 126  }
   0xd   : > { %s273_s29 = scalar_lea.vmem %s1239_s0, %s956_s26  ;;  %984 = vset.pattern.permute.xlu0 %v1000_v3  ;;  %v293_v6 = vshrl.u32 %v285_v5, 7  ;;  %v1090_v7 = vand.u32 127, %v285_v5  ;;  %v943_v13 = vld [vmem:[%s1242_s3 + $0x7] ss:$8 sm:$0x3]  ;;  %s1007_s19 = smov 2  }
   0xe   : > { %v1067_v0 = vld [vmem:[%s273_s29] sm:$0xff]  ;;  %v1071_v1 = vld [vmem:[%s273_s29 + $0x8] sm:$0xff]  ;;  %s1008_s20 = smov 30   ;;  %s1009_s21 = smov 32  }
   0xf   : > { %428 = vrot.lane.b32.xlu1 %v1067_v0, %s993_s30  ;;  %452 = vrot.lane.b32.xlu0 %v1067_v0, %s994_s8  ;;  %v1092_v8 = vsub.s32 0, %v293_v6  ;;  %v1094_v9 = vsub.s32 1, %v293_v6  ;;  %vm432_vm0 = vcmp.lt.s32.totalorder %v1090_v7, 112  ;;  %vm456_vm1 = vcmp.lt.s32.totalorder %v1090_v7, 111  ;;  %s1010_s22 = smov 34   ;;  %s278_s28 = scalar_lea.vmem %s1246_s7, %s956_s26 }
  0x10   : > { %v942_v15 = vld [vmem:[%s1242_s3 + $0x6] ss:$8 sm:$0x3]  ;;  %vm408_vm2 = vcmp.lt.s32.totalorder %v1090_v7, 113  ;;  %vm384_vm3 = vcmp.lt.s32.totalorder %v1090_v7, 127  ;;  %vm358_vm4 = vcmp.lt.s32.totalorder %v1090_v7, 1 }
  0x11   : > { %v469_v14 = vrot.slane %v944_v10, %v1094_v9  ;;  %v465_v16 = vrot.slane %v944_v10, %v1092_v8  ;;  %v441_v17 = vrot.slane %v943_v13, %v1092_v8  ;;  %v445_v18 = vrot.slane %v943_v13, %v1094_v9  ;;  %v941_v29 = vld [vmem:[%s1242_s3 + $0x5] ss:$8 sm:$0x3]  ;;  %v940_v40 = vld [vmem:[%s1242_s3 + $0x3] ss:$8 sm:$0x3] }
  0x12   : > { %v417_v24 = vrot.slane %v942_v15, %v1092_v8  ;;  %v421_v27 = vrot.slane %v942_v15, %v1094_v9  ;;  %v393_v38 = vrot.slane %v941_v29, %v1092_v8  ;;  %v397_v39 = vrot.slane %v941_v29, %v1094_v9  ;;  %v939_v49 = vld [vmem:[%s1242_s3 + $0x2] ss:$8 sm:$0x3]  ;;  %v938_v58 = vld [vmem:[%s1242_s3 + $0x1] ss:$8 sm:$0x3] }
  0x13   : > { %430 = vrot.lane.b32.xlu1 %v1071_v1, %s993_s30  ;;  %454 = vrot.lane.b32.xlu0 %v1071_v1, %s994_s8  ;;  %v367_v47 = vrot.slane %v940_v40, %v1092_v8  ;;  %v371_v48 = vrot.slane %v940_v40, %v1094_v9  ;;  %vm334_vm5 = vcmp.lt.s32.totalorder %v1090_v7, 15  ;;  %v343_v56 = vrot.slane %v939_v49, %v1092_v8  ;;  %v790_v29 = vld [vmem:[%s1244_s5] sm:$0xff] }
  0x14   : > { %v347_v57 = vrot.slane %v939_v49, %v1094_v9  ;;  %vm310_vm6 = vcmp.lt.s32.totalorder %v1090_v7, 16  ;;  %v319_v2 = vrot.slane %v938_v58, %v1092_v8  ;;  %v323_v3 = vrot.slane %v938_v58, %v1094_v9 }
  0x15   : > { %vm287_vm7 = vcmp.lt.s32.totalorder %v1090_v7, 17  ;;  %vm751_vm9 = vcmp.lt.s32.totalorder %v1090_v7, 94  ;;  %vm727_vm10 = vcmp.lt.s32.totalorder %v1090_v7, 96  ;;  %vm703_vm11 = vcmp.lt.s32.totalorder %v1090_v7, 98 }
  0x16   : > { %vm679_vm12 = vcmp.lt.s32.totalorder %v1090_v7, 126  ;;  %vm653_vm13 = vcmp.lt.s32.totalorder %v1090_v7, 2  ;;  %vm629_vm14 = vcmp.lt.s32.totalorder %v1090_v7, 30  ;;  %vm605_vm15 = vcmp.lt.s32.totalorder %v1090_v7, 32 }
  0x17   : > { %406 = vrot.lane.b32.xlu1 %v1071_v1, %s995_s9  ;;  %404 = vrot.lane.b32.xlu0 %v1067_v0, %s995_s9 }
  0x1b   : > { %382 = vrot.lane.b32.xlu1 %v1071_v1, %s996_s10  ;;  %380 = vrot.lane.b32.xlu0 %v1067_v0, %s996_s10 }
  0x1f   : > { %356 = vrot.lane.b32.xlu1 %v1071_v1, %s997_s11  ;;  %354 = vrot.lane.b32.xlu0 %v1067_v0, %s997_s11 }
  0x23   : > { %332 = vrot.lane.b32.xlu1 %v1071_v1, %s999_s12  ;;  %330 = vrot.lane.b32.xlu0 %v1067_v0, %s999_s12 }
  0x27   : > { %308 = vrot.lane.b32.xlu1 %v1071_v1, %s1001_s13  ;;  %306 = vrot.lane.b32.xlu0 %v1067_v0, %s1001_s13 }
  0x2b   : > { %283 = vrot.lane.b32.xlu1 %v1071_v1, %s1002_s14  ;;  %281 = vrot.lane.b32.xlu0 %v1067_v0, %s1002_s14 }
  0x2f   : > { %498 = vperm.xlu0 %984, %v495_v4  }
  0x81   : > { %v429_v11 = vpop.permute.xlu1 %428  ;;  %v453_v12 = vpop.permute.xlu0 %452 }
  0x85   : > { %v431_v19 = vpop.permute.xlu1 %430  ;;  %v455_v20 = vpop.permute.xlu0 %454 }
  0x86   : > { %v434_v21 = vsel %vm432_vm0, %v431_v19, %v429_v11  ;;  %v457_v22 = vsel %vm456_vm1, %v453_v12, %v455_v20  ;;  %v458_v23 = vsel %vm456_vm1, %v455_v20, %v453_v12  ;;  %v433_v25 = vsel %vm432_vm0, %v429_v11, %v431_v19 }
  0x87   : > { %v473_v26 = vmul.f32 %v469_v14, %v458_v23  ;;  %v472_v28 = vmul.f32 %v465_v16, %v457_v22  ;;  %v449_v30 = vmul.f32 %v445_v18, %v434_v21  ;;  %v448_v33 = vmul.f32 %v441_v17, %v433_v25  ;;  %v476_v21 = vld [vmem:[%s1240_s1] sm:$0xff] }
  0x88   : > { %vm582_vm0 = vcmp.lt.s32.totalorder %v1090_v7, 34 }
  0x89   : > { %v407_v31 = vpop.permute.xlu1 %406  ;;  %519 = vmatprep.subr.mxu0 %v473_v26  ;;  %v405_v32 = vpop.permute.xlu0 %404 }
  0x8a   : > { %v409_v34 = vsel %vm408_vm2, %v405_v32, %v407_v31  ;;  %v410_v35 = vsel %vm408_vm2, %v407_v31, %v405_v32  ;;  %520 = vmatpush1.msra.mxu0 %v472_v28 }
  0x8b   : > { %v424_v36 = vmul.f32 %v417_v24, %v409_v34  ;;  %v425_v37 = vmul.f32 %v421_v27, %v410_v35  ;;  %521 = vmatprep.subr.mxu0 %v449_v30  ;;  %v952_v30 = vld [vmem:[%s1245_s6 + $0x10] ss:$8 sm:$0x3]  ;;  %v951_v35 = vld [vmem:[%s1245_s6 + $0x7] ss:$8 sm:$0x3] }
  0x8c   : > { %522 = vmatpush1.msra.mxu0 %v448_v33  ;;  %v764_v33 = vrot.slane %v952_v30, %v1094_v9  ;;  %v760_v34 = vrot.slane %v952_v30, %v1092_v8 }
  0x8d   : > { %v383_v41 = vpop.permute.xlu1 %382  ;;  %523 = vmatprep.subr.mxu0 %v425_v37  ;;  %v381_v42 = vpop.permute.xlu0 %380 }
  0x8e   : > { %v385_v43 = vsel %vm384_vm3, %v381_v42, %v383_v41  ;;  %v386_v44 = vsel %vm384_vm3, %v383_v41, %v381_v42  ;;  %524 = vmatpush1.msra.mxu0 %v424_v36  ;;  %v736_v41 = vrot.slane %v951_v35, %v1092_v8  ;;  %v740_v42 = vrot.slane %v951_v35, %v1094_v9 }
  0x8f   : > { %v400_v45 = vmul.f32 %v393_v38, %v385_v43  ;;  %v401_v46 = vmul.f32 %v397_v39, %v386_v44  ;;  %v950_v44 = vld [vmem:[%s1245_s6 + $0x6] ss:$8 sm:$0x3] }
  0x91   : > { %v357_v50 = vpop.permute.xlu1 %356  ;;  %525 = vmatprep.subr.mxu0 %v401_v46  ;;  %v355_v51 = vpop.permute.xlu0 %354 }
  0x92   : > { %v359_v52 = vsel %vm358_vm4, %v355_v51, %v357_v50  ;;  %v360_v53 = vsel %vm358_vm4, %v357_v50, %v355_v51  ;;  %526 = vmatpush1.msra.mxu0 %v400_v45  ;;  %v712_v51 = vrot.slane %v950_v44, %v1092_v8 }
  0x93   : > { %v374_v54 = vmul.f32 %v367_v47, %v360_v53  ;;  %v375_v55 = vmul.f32 %v371_v48, %v359_v52  ;;  %527 = vmatprep.subr.mxu0 %v1071_v1  ;;  %v716_v52 = vrot.slane %v950_v44, %v1094_v9  ;;  %v949_v53 = vld [vmem:[%s1245_s6 + $0x5] ss:$8 sm:$0x3] }
  0x94   : > { %528 = vmatpush1.msra.mxu0 %v1067_v0  ;;  %v290_v0 = vld [vmem:[%s1242_s3] ss:$8 sm:$0x3] }
  0x95   : > { %v333_v59 = vpop.permute.xlu1 %332  ;;  %529 = vmatprep.subr.mxu0 %v375_v55  ;;  %v331_v60 = vpop.permute.xlu0 %330  ;;  %v295_v13 = vrot.slane %v290_v0, %v1092_v8  ;;  %v299_v14 = vrot.slane %v290_v0, %v1094_v9 }
  0x96   : > { %v335_v61 = vsel %vm334_vm5, %v331_v60, %v333_v59  ;;  %v336_v62 = vsel %vm334_vm5, %v333_v59, %v331_v60  ;;  %530 = vmatpush1.msra.mxu0 %v374_v54  ;;  %v688_v60 = vrot.slane %v949_v53, %v1092_v8 }
  0x97   : > { %v350_v63 = vmul.f32 %v343_v56, %v336_v62  ;;  %v351_v1 = vmul.f32 %v347_v57, %v335_v61  ;;  %v692_v61 = vrot.slane %v949_v53, %v1094_v9  ;;  %v948_v62 = vld [vmem:[%s1245_s6 + $0x3] ss:$8 sm:$0x3] }
  0x99   : > { %v309_v4 = vpop.permute.xlu1 %308  ;;  %531 = vmatprep.subr.mxu0 %v351_v1  ;;  %v307_v5 = vpop.permute.xlu0 %306 }
  0x9a   : > { %v311_v6 = vsel %vm310_vm6, %v307_v5, %v309_v4  ;;  %v312_v10 = vsel %vm310_vm6, %v309_v4, %v307_v5  ;;  %532 = vmatpush1.msra.mxu0 %v350_v63  ;;  %v662_v4 = vrot.slane %v948_v62, %v1092_v8  ;;  %v666_v5 = vrot.slane %v948_v62, %v1094_v9 }
  0x9b   : > { %v326_v11 = vmul.f32 %v319_v2, %v312_v10  ;;  %v327_v12 = vmul.f32 %v323_v3, %v311_v6  ;;  %v947_v6 = vld [vmem:[%s1245_s6 + $0x2] ss:$8 sm:$0x3] }
  0x9d   : > { %v284_v15 = vpop.permute.xlu1 %283  ;;  %533 = vmatprep.subr.mxu0 %v327_v12  ;;  %v282_v16 = vpop.permute.xlu0 %281 }
  0x9e   : > { %v288_v17 = vsel %vm287_vm7, %v282_v16, %v284_v15  ;;  %v289_v18 = vsel %vm287_vm7, %v284_v15, %v282_v16  ;;  %534 = vmatpush1.msra.mxu0 %v326_v11  ;;  %v638_v16 = vrot.slane %v947_v6, %v1092_v8 }
  0x9f   : > { %v302_v19 = vmul.f32 %v295_v13, %v289_v18  ;;  %v303_v20 = vmul.f32 %v299_v14, %v288_v17  ;;  %v642_v17 = vrot.slane %v947_v6, %v1094_v9  ;;  %v946_v18 = vld [vmem:[%s1245_s6 + $0x1] ss:$8 sm:$0x3] }
  0xa1   : > { %535 = vmatprep.subr.mxu0 %v303_v20 }
  0xa2   : > { %536 = vmatpush1.msra.mxu0 %v302_v19 }
  0xa3   : > { %945 = vmatmul.mubr.msk.f32.vlgmr.msra.gmra.mxu0 %vm501_vm8, %v476_v21 }
  0xaa   : > { %v499_v22 = vpop.permute.xlu0 %498 }
 0x163   : > { %v571_v23 = vpop.f32.mrf.mxu0 }
 0x164   : > { %v572_v24 = vadd.f32 %v571_v23, %v499_v22 }
 0x165   : > { %v573_v25 = vpop.f32.mrf.mxu0 }
 0x166   : > { %v1154_v26 = vmax.f32 %v572_v24, 0.0  ;;  %v574_v27 = vadd.f32 %v573_v25, %v499_v22  ;;  %v614_v25 = vrot.slane %v946_v18, %v1092_v8 }
 0x168   : > { %723 = vrot.lane.b32.xlu0 %v1154_v26, %s1003_s15  ;;  %747 = vrot.lane.b32.xlu1 %v1154_v26, %s1004_s16  ;;  %v1158_v28 = vmax.f32 %v574_v27, 0.0  ;;  %v618_v27 = vrot.slane %v946_v18, %v1094_v9 }
 0x16c   : > { %699 = vrot.lane.b32.xlu0 %v1154_v26, %s1005_s17  ;;  %749 = vrot.lane.b32.xlu1 %v1158_v28, %s1004_s16 }
 0x170   : > { %675 = vrot.lane.b32.xlu0 %v1154_v26, %s1006_s18  ;;  %725 = vrot.lane.b32.xlu1 %v1158_v28, %s1003_s15 }
 0x174   : > { %649 = vrot.lane.b32.xlu0 %v1154_v26, %s1007_s19  ;;  %701 = vrot.lane.b32.xlu1 %v1158_v28, %s1005_s17 }
 0x178   : > { %625 = vrot.lane.b32.xlu0 %v1154_v26, %s1008_s20  ;;  %677 = vrot.lane.b32.xlu1 %v1158_v28, %s1006_s18 }
 0x17c   : > { %601 = vrot.lane.b32.xlu0 %v1154_v26, %s1009_s21  ;;  %651 = vrot.lane.b32.xlu1 %v1158_v28, %s1007_s19 }
 0x180   : > { %578 = vrot.lane.b32.xlu0 %v1154_v26, %s1010_s22  ;;  %627 = vrot.lane.b32.xlu1 %v1158_v28, %s1008_s20 }
 0x184   : > { %793 = vperm.xlu0 %984, %v790_v29   ;;  %603 = vrot.lane.b32.xlu1 %v1158_v28, %s1009_s21 }
 0x188   : > { %580 = vrot.lane.b32.xlu1 %v1158_v28, %s1010_s22 }
 0x1da   : > { %v724_v31 = vpop.permute.xlu0 %723  ;;  %v748_v32 = vpop.permute.xlu1 %747 }
 0x1de   : > { %v700_v36 = vpop.permute.xlu0 %699  ;;  %v750_v37 = vpop.permute.xlu1 %749 }
 0x1df   : > { %v752_v38 = vsel %vm751_vm9, %v748_v32, %v750_v37  ;;  %v753_v39 = vsel %vm751_vm9, %v750_v37, %v748_v32 }
 0x1e0   : > { %v768_v40 = vmul.f32 %v764_v33, %v753_v39  ;;  %v767_v43 = vmul.f32 %v760_v34, %v752_v38 }
 0x1e2   : > { %v676_v45 = vpop.permute.xlu0 %675  ;;  %813 = vmatprep.subr.mxu1 %v768_v40  ;;  %v726_v46 = vpop.permute.xlu1 %725 }
 0x1e3   : > { %v728_v47 = vsel %vm727_vm10, %v724_v31, %v726_v46  ;;  %v729_v48 = vsel %vm727_vm10, %v726_v46, %v724_v31  ;;  %814 = vmatpush1.msra.mxu1 %v767_v43 }
 0x1e4   : > { %v743_v49 = vmul.f32 %v736_v41, %v728_v47  ;;  %v744_v50 = vmul.f32 %v740_v42, %v729_v48  ;;  %v771_v41 = vld [vmem:[%s1243_s4] sm:$0xff] }
 0x1e6   : > { %815 = vmatprep.subr.mxu1 %v744_v50  ;;  %v702_v54 = vpop.permute.xlu1 %701  ;;  %v650_v57 = vpop.permute.xlu0 %649 }
 0x1e7   : > { %v704_v55 = vsel %vm703_vm11, %v700_v36, %v702_v54  ;;  %v705_v56 = vsel %vm703_vm11, %v702_v54, %v700_v36  ;;  %816 = vmatpush1.msra.mxu1 %v743_v49 }
 0x1e8   : > { %v719_v58 = vmul.f32 %v712_v51, %v704_v55  ;;  %v720_v59 = vmul.f32 %v716_v52, %v705_v56 }
 0x1ea   : > { %817 = vmatprep.subr.mxu1 %v720_v59  ;;  %v678_v63 = vpop.permute.xlu1 %677  ;;  %v626_v10 = vpop.permute.xlu0 %625 }
 0x1eb   : > { %v680_v1 = vsel %vm679_vm12, %v676_v45, %v678_v63  ;;  %v681_v2 = vsel %vm679_vm12, %v678_v63, %v676_v45  ;;  %818 = vmatpush1.msra.mxu1 %v719_v58 }
 0x1ec   : > { %v695_v3 = vmul.f32 %v688_v60, %v680_v1  ;;  %v696_v0 = vmul.f32 %v692_v61, %v681_v2 }
 0x1ee   : > { %819 = vmatprep.subr.mxu1 %v696_v0  ;;  %v652_v11 = vpop.permute.xlu1 %651  ;;  %v602_v22 = vpop.permute.xlu0 %601 }
 0x1ef   : > { %v654_v12 = vsel %vm653_vm13, %v650_v57, %v652_v11  ;;  %v655_v13 = vsel %vm653_vm13, %v652_v11, %v650_v57  ;;  %820 = vmatpush1.msra.mxu1 %v695_v3 }
 0x1f0   : > { %v669_v14 = vmul.f32 %v662_v4, %v655_v13  ;;  %v670_v15 = vmul.f32 %v666_v5, %v654_v12  ;;  %821 = vmatprep.subr.mxu1 %v1158_v28 }
 0x1f1   : > { %822 = vmatpush1.msra.mxu1 %v1154_v26  ;;  %v585_v26 = vld [vmem:[%s1245_s6] ss:$8 sm:$0x3] }
 0x1f2   : > { %823 = vmatprep.subr.mxu1 %v670_v15  ;;  %v628_v19 = vpop.permute.xlu1 %627  ;;  %v590_v33 = vrot.slane %v585_v26, %v1092_v8  ;;  %v594_v34 = vrot.slane %v585_v26, %v1094_v9  ;;  %v579_v35 = vpop.permute.xlu0 %578 }
 0x1f3   : > { %v630_v20 = vsel %vm629_vm14, %v626_v10, %v628_v19  ;;  %v631_v21 = vsel %vm629_vm14, %v628_v19, %v626_v10  ;;  %824 = vmatpush1.msra.mxu1 %v669_v14 }
 0x1f4   : > { %v645_v23 = vmul.f32 %v638_v16, %v631_v21  ;;  %v646_v24 = vmul.f32 %v642_v17, %v630_v20 }
 0x1f6   : > { %825 = vmatprep.subr.mxu1 %v646_v24  ;;  %v604_v28 = vpop.permute.xlu1 %603 }
 0x1f7   : > { %v606_v29 = vsel %vm605_vm15, %v602_v22, %v604_v28  ;;  %v607_v30 = vsel %vm605_vm15, %v604_v28, %v602_v22  ;;  %826 = vmatpush1.msra.mxu1 %v645_v23 }
 0x1f8   : > { %v621_v31 = vmul.f32 %v614_v25, %v607_v30  ;;  %v622_v32 = vmul.f32 %v618_v27, %v606_v29 }
 0x1fa   : > { %827 = vmatprep.subr.mxu1 %v622_v32  ;;  %v581_v36 = vpop.permute.xlu1 %580 }
 0x1fb   : > { %v583_v37 = vsel %vm582_vm0, %v579_v35, %v581_v36  ;;  %v584_v38 = vsel %vm582_vm0, %v581_v36, %v579_v35  ;;  %828 = vmatpush1.msra.mxu1 %v621_v31 }
 0x1fc   : > { %v597_v39 = vmul.f32 %v590_v33, %v584_v38  ;;  %v598_v40 = vmul.f32 %v594_v34, %v583_v37 }
 0x1fe   : > { %829 = vmatprep.subr.mxu1 %v598_v40 }
 0x1ff   : > { %830 = vmatpush1.msra.mxu1 %v597_v39  ;;  %v794_v7 = vpop.permute.xlu0 %793 }
 0x200   : > { %953 = vmatmul.mubr.msk.f32.vlgmr.msra.gmra.mxu1 %vm501_vm8, %v771_v41 }
 0x2c0   : > { %v865_v8 = vpop.f32.mrf.mxu1 }
 0x2c1   : > { %v866_v9 = vadd.f32 %v865_v8, %v794_v7 }
 0x2c2   : > { %v867_v42 = vpop.f32.mrf.mxu1 }
 0x2c3   : > { %v870_v43 = vmax.f32 %v866_v9, 0.0  ;;  %v868_v44 = vadd.f32 %v867_v42, %v794_v7 }
 0x2c5   : > { %872 = vst [vmem:[%s278_s28] sm:$0xff] %v870_v43  ;;  %v871_v45 = vmax.f32 %v868_v44, 0.0 }
 0x2c7   : > { %873 = vst [vmem:[%s278_s28 + $0x8] sm:$0xff] %v871_v45 }
 0x2c8 PF: > { %s17_s24 = sadd.s32 1, %s991_s24  }
 0x2c9   : > { %p14_p4 = scmp.ge.s32.totalorder %s17_s24, 4  }
 0x2cb   :  { %16 = sbr.rel (!%p14_p4) target bundleno = 1 (0x1), region = 92 }

</bundles_post_ra>
